<compile_context>
chip_gen: v5e
topology: v5e:2x2
jax: 0.10.0
libtpu: 0.0.40
codegen_flags: <defaults>
</compile_context>

<pallas_src>
import functools

import jax
import jax.numpy as jnp
from jax.experimental import pallas as pl
from jax.experimental.pallas import tpu as pltpu

_LANE = 128
_SUBLANE = 8


def _round_up(v, m):
    return ((v + m - 1) // m) * m


def _round_down(v, m):
    return (v // m) * m


@functools.lru_cache(maxsize=1)
def _chip_params():
    """Returns (tile_budget_bytes, vmem_limit_bytes, num_tensorcores)."""
    kind = ""
    try:
        kind = jax.devices()[0].device_kind.lower()
    except Exception:
        pass
    cap = 0
    try:
        info = pltpu.get_tpu_info()
        cap = int(getattr(info, "vmem_capacity_bytes", 0) or 0)
    except Exception:
        cap = 0
    if cap <= 0:
        cap = 64 << 20  # conservative default
    # Leave headroom for Mosaic-internal scratch / semaphores.
    vmem_limit = min((cap * 3) // 4, 100 << 20)
    cores = 1
    if "v7" in kind:
        # v7x: 64 MiB per TensorCore (get_tpu_info may report per-chip);
        # clamp hard, and assume two TensorCores share "parallel" grid axes.
        vmem_limit = min(vmem_limit, 48 << 20)
        cores = 2
    # ~0.8x: bytes_per_elem below already accounts for double-buffering, so
    # do NOT halve the budget again (previous version double-counted this).
    tile_budget = (vmem_limit * 4) // 5
    return tile_budget, vmem_limit, cores


# --------------- single-pass kernel: whole reduction column resident --------

def _softmax_cols_kernel(x_ref, o_ref, *, d, tile_d, mask_cols):
    x = x_ref[...].astype(jnp.float32)
    if mask_cols:
        # Ragged tail D block: Pallas pads OOB reads with garbage; neutralize
        # those columns (their outputs are dropped on store anyway).
        cols = (jax.lax.broadcasted_iota(jnp.int32, x.shape, 1)
                + pl.program_id(0) * tile_d)
        x = jnp.where(cols < d, x, 0.0)
    x_max = jnp.max(x, axis=0, keepdims=True)             # torch.max(dim=0)
    x_exp = jnp.exp(x - x_max)                            # torch.exp(x - max)
    inv = pl.reciprocal(jnp.sum(x_exp, axis=0, keepdims=True), approx=False)
    o_ref[...] = (x_exp * inv).astype(o_ref.dtype)


def _softmax_single_pass(x2d, n, d, tile_budget, vmem_limit, cores,
                         bytes_per_elem, col_block=None):
    # Largest lane-multiple tile that fits the VMEM budget (streams only hit
    # the HBM roofline plateau at >= 512 lanes), capped at 2048.
    max_tile = _round_down(tile_budget // max(bytes_per_elem * n, 1), _LANE)
    tile_d = max(_LANE, min(max_tile, 2048))
    if cores >= 2:
        # v7x-class: keep >= 2 blocks per TensorCore so each core's
        # double-buffering overlaps DMA with compute.  Single-TC chips
        # (v5e/v6e) skip this — bigger blocks win there.
        cand = _round_down(d // (2 * cores), _LANE)
        if cand >= _LANE:
            tile_d = min(tile_d, cand)
    if col_block is not None:
        tile_d = max(_LANE, _round_up(int(col_block), _LANE))
    if tile_d >= d:
        tile_d = d          # one full-width block; waives the 128-lane rule
    grid_d = pl.cdiv(d, tile_d)
    mask_cols = (grid_d * tile_d) != d

    kernel = functools.partial(_softmax_cols_kernel, d=d, tile_d=tile_d,
                               mask_cols=mask_cols)
    return pl.pallas_call(
        kernel,
        out_shape=jax.ShapeDtypeStruct((n, d), x2d.dtype),
        grid_spec=pltpu.PrefetchScalarGridSpec(
            num_scalar_prefetch=0,
            grid=(grid_d,),
            in_specs=[pl.BlockSpec((n, tile_d), lambda j: (0, j))],
            out_specs=pl.BlockSpec((n, tile_d), lambda j: (0, j)),
        ),
        compiler_params=pltpu.CompilerParams(
            dimension_semantics=("parallel",),
            vmem_limit_bytes=vmem_limit,
        ),
    )(x2d)


# --------------- fused two-pass (online) path: no VMEM ceiling on N ---------

def _softmax_fused_kernel(x_ref, o_ref, m_sc, l_sc, *, n, tile_n):
    phase = pl.program_id(1)
    i = pl.program_id(2)

    @pl.when(jnp.logical_and(phase == 0, i == 0))
    def _():
        m_sc[...] = jnp.full_like(m_sc, -jnp.inf)
        l_sc[...] = jnp.zeros_like(l_sc)

    x = x_ref[...].astype(jnp.float32)

    @pl.when(phase == 0)
    def _():
        # Online (flash-style) running max / rescaled running sum.  Mask the
        # ragged tail rows of the last N block to -inf (OOB reads are
        # garbage) so they contribute nothing to max / sum.
        rows = jax.lax.broadcasted_iota(jnp.int32, x.shape, 0) + i * tile_n
        xm = jnp.where(rows < n, x, -jnp.inf)
        m_prev = m_sc[...]
        m_new = jnp.maximum(m_prev, jnp.max(xm, axis=0, keepdims=True))
        l_sc[...] = (l_sc[...] * jnp.exp(m_prev - m_new)
                     + jnp.sum(jnp.exp(xm - m_new), axis=0, keepdims=True))
        m_sc[...] = m_new

    @pl.when(phase == 1)
    def _():
        # Normalize.  Out-of-bounds rows/columns only produce garbage values
        # that Pallas drops on store, so no masking is needed here.
        x_exp = jnp.exp(x - m_sc[...])
        inv = pl.reciprocal(l_sc[...], approx=False)
        o_ref[...] = (x_exp * inv).astype(o_ref.dtype)


def _softmax_two_pass(x2d, n, d, tile_budget, vmem_limit, cores,
                      bytes_per_elem, row_block=None):
    # Lane tile: one full-width block for modest D, otherwise big
    # 128-multiples so per-grid-step overhead amortizes against HBM streaming.
    tile_d_cap = 1024
    tile_d = d if d <= tile_d_cap else tile_d_cap
    # Row tile from the VMEM budget (larger cap on high-bandwidth 2-TC parts).
    tile_n = _round_down(tile_budget // max(bytes_per_elem * tile_d, 1),
                         _SUBLANE)
    tile_n = max(_SUBLANE, min(tile_n, 2048 if cores >= 2 else 1024))
    if row_block is not None:
        tile_n = max(_SUBLANE, _round_up(int(row_block), _SUBLANE))
    if tile_n >= n:
        tile_n = n          # full-dim block; waives the sublane rule
    d_blocks = pl.cdiv(d, tile_d)
    n_blocks = pl.cdiv(n, tile_n)

    kernel = functools.partial(_softmax_fused_kernel, n=n, tile_n=tile_n)
    return pl.pallas_call(
        kernel,
        out_shape=jax.ShapeDtypeStruct((n, d), x2d.dtype),
        grid_spec=pltpu.PrefetchScalarGridSpec(
            num_scalar_prefetch=0,
            # Fused stats + normalize: the phase axis (size 2) replaces a
            # second pallas_call and the m/l HBM round trip; m/l live only in
            # VMEM scratch.
            grid=(d_blocks, 2, n_blocks),
            in_specs=[pl.BlockSpec((tile_n, tile_d), lambda j, p, i: (i, j))],
            # During the stats phase the output index stays parked on
            # row-block 0 (never stored by the kernel), so no garbage block is
            # ever written back and each output block is written exactly once.
            out_specs=pl.BlockSpec((tile_n, tile_d),
                                   lambda j, p, i: (p * i, j)),
            scratch_shapes=[pltpu.VMEM((1, tile_d), jnp.float32),
                            pltpu.VMEM((1, tile_d), jnp.float32)],
        ),
        compiler_params=pltpu.CompilerParams(
            dimension_semantics=("parallel", "arbitrary", "arbitrary"),
            vmem_limit_bytes=vmem_limit,
        ),
    )(x2d)


# --------------------------------- wrapper ----------------------------------

def softmax_stable(x, *, force_two_pass=False, row_block=None, col_block=None):
    """Numerically-stable softmax over axis 0, arbitrary-rank input."""
    orig_shape = x.shape
    n = int(orig_shape[0])
    d = 1
    for s in orig_shape[1:]:
        d *= int(s)
    d = max(d, 1)
    x2d = x.reshape(n, d)

    tile_budget, vmem_limit, cores = _chip_params()
    itemsize = jnp.dtype(x2d.dtype).itemsize
    # Per resident-block element: double-buffered in + out blocks plus f32
    # intermediates (the budget itself already carries the safety headroom).
    bytes_per_elem = 4 * itemsize + 8

    # Single-pass needs one lane-wide column stripe with all N rows resident.
    fits_single = bytes_per_elem * n * min(d, _LANE) <= tile_budget
    if force_two_pass or not fits_single:
        out2d = _softmax_two_pass(x2d, n, d, tile_budget, vmem_limit, cores,
                                  bytes_per_elem, row_block=row_block)
    else:
        out2d = _softmax_single_pass(x2d, n, d, tile_budget, vmem_limit, cores,
                                     bytes_per_elem, col_block=col_block)
    return out2d.reshape(orig_shape)


def _reference_softmax0(x):
    x_max = jnp.max(x, axis=0, keepdims=True)
    x_exp = jnp.exp(x - x_max)
    return x_exp / jnp.sum(x_exp, axis=0, keepdims=True)


if __name__ == "__main__":
    key = jax.random.PRNGKey(0)
    k1, k2, k3, k4 = jax.random.split(key, 4)

    # Primary case from the module: softmax over dim 0 of (seq=8, hidden=32).
    x = jax.random.normal(k1, (8, 32), dtype=jnp.float32)
    out = jax.block_until_ready(softmax_stable(x))
    ref = _reference_softmax0(x)
    assert out.shape == x.shape and out.dtype == x.dtype
    assert jnp.allclose(out, ref, atol=1e-6, rtol=1e-6)
    assert jnp.allclose(jnp.sum(out, axis=0), jnp.ones((32,)), atol=1e-5)

    # Higher-rank input, D (=60) not a multiple of 128: one full-width block,
    # no wrapper-side pad / slice passes.
    x3 = jax.random.normal(k2, (8, 3, 20), dtype=jnp.float32)
    out3 = jax.block_until_ready(softmax_stable(x3))
    assert jnp.allclose(out3, _reference_softmax0(x3), atol=1e-6, rtol=1e-6)

    # Ragged lane tiling: D=200 split into 128-wide blocks with an in-kernel
    # masked partial tail block (cdiv grid, no padding / slicing).
    x4 = jax.random.normal(k4, (16, 200), dtype=jnp.float32)
    out4 = jax.block_until_ready(softmax_stable(x4, col_block=128))
    assert jnp.allclose(out4, _reference_softmax0(x4), atol=1e-6, rtol=1e-6)

    # Fused online two-pass (large-N fallback), forced with small row blocks
    # so the running max / sum accumulates over several N blocks, including a
    # ragged (masked) last block: n=50 with tile_n=16.
    x_big = jax.random.normal(k3, (50, 3, 32), dtype=jnp.float32)
    out_big = jax.block_until_ready(
        softmax_stable(x_big, force_two_pass=True, row_block=16))
    assert jnp.allclose(out_big, _reference_softmax0(x_big),
                        atol=1e-5, rtol=1e-5)

    print("KERNEL_OK")
</pallas_src>

<mosaic_0001>
module attributes {stable_mosaic.version = 11 : i64} {
  func.func @_softmax_cols_kernel(%arg0: i32, %arg1: memref<8x32xf32, #tpu.memory_space<vmem>>, %arg2: memref<8x32xf32, #tpu.memory_space<vmem>>) attributes {dimension_semantics = [#tpu.dimension_semantics<parallel>], iteration_bounds = array<i64: 1>, scalar_prefetch = 0 : i64, scratch_operands = 0 : i64, tpu.core_type = #tpu.core_type<tc>, window_params = [{transform_indices = @transform_0, window_bounds = array<i64: 8, 32>}, {transform_indices = @transform_1, window_bounds = array<i64: 8, 32>}]} {
    %c0 = arith.constant 0 : index
    %c0_0 = arith.constant 0 : index
    %0 = vector.load %arg1[%c0, %c0_0] : memref<8x32xf32, #tpu.memory_space<vmem>>, vector<8x32xf32>
    %cst = arith.constant dense<0xFF800000> : vector<32xf32>
    %1 = vector.multi_reduction <maximumf>, %0, %cst [0] : vector<8x32xf32> to vector<32xf32>
    %2 = vector.shape_cast %1 : vector<32xf32> to vector<1x32xf32>
    %3 = vector.broadcast %2 : vector<1x32xf32> to vector<8x32xf32>
    %4 = arith.subf %0, %3 : vector<8x32xf32>
    %5 = math.exp %4 : vector<8x32xf32>
    %cst_1 = arith.constant dense<0.000000e+00> : vector<32xf32>
    %6 = vector.multi_reduction <add>, %5, %cst_1 [0] : vector<8x32xf32> to vector<32xf32>
    %7 = vector.shape_cast %6 : vector<32xf32> to vector<1x32xf32>
    %8 = tpu.reciprocal %7 : vector<1x32xf32> -> vector<1x32xf32>
    %9 = vector.broadcast %8 : vector<1x32xf32> to vector<8x32xf32>
    %10 = arith.mulf %5, %9 : vector<8x32xf32>
    %c0_2 = arith.constant 0 : index
    %c0_3 = arith.constant 0 : index
    %11 = vector.load %arg2[%c0_2, %c0_3] : memref<8x32xf32, #tpu.memory_space<vmem>>, vector<8x32xf32>
    tpu.vector_store %arg2[%c0_2, %c0_3], %10 {strides = array<i32>} : memref<8x32xf32, #tpu.memory_space<vmem>>, vector<8x32xf32>,
    return
  }
  func.func @transform_0(%arg0: i32) -> (i32, i32) {
    %c0_i32 = arith.constant 0 : i32
    %c0_i32_0 = arith.constant 0 : i32
    return %c0_i32, %arg0 : i32, i32
  }
  func.func @transform_1(%arg0: i32) -> (i32, i32) {
    %c0_i32 = arith.constant 0 : i32
    %c0_i32_0 = arith.constant 0 : i32
    return %c0_i32, %arg0 : i32, i32
  }
}

</mosaic_0001>

<bundles_post_ra>
// kernel: tpu_custom_call.1
= control target key start
LH: loop header
LB: loop body
LE: loop exit
PB: predicated region body
PF: predicated region fallthrough
CT: control target
= control target key end

     0   :  { %6 = vsyncpa [#allocation3], 0  ;;  %s154_s0 = inlined_call_operand.hbm [shape: f32[8,32], index: 0, kind: input, shape index: {}]   ;;  %s155_s1 = inlined_call_operand.hbm [shape: f32[8,32], index: 1, kind: output, shape index: {}]  }
   0x1   :  { %7 = vsyncpa [#allocation4], 0  ;;  %s13_s8 = sshll.u32 %s154_s0, 4  ;;  %s133_s9 = smov [#allocation2]   ;;  %s14_s8 = int_to_ptr.hbm [resolvable:$true] %s13_s8 }
   0x2   :  { %s15_s10 = sshll.u32 %s133_s9, 4  ;;  %s16_s10 = int_to_ptr.vmem [resolvable:$true] %s15_s10 }
   0x3   :  { %18 = dma.hbm_to_vmem [thread:$0]  %s14_s8, 128, %s16_s10, [#allocation3]  }
   0x4   :  { %129 = dma.done.wait [#allocation3], 128  }
   0x5   :  { %130 = vsyncadd [#allocation3], 4294967168  ;;  %vm24_vm0 = vcmask 261120   ;;  %v23_v0 = vld [vmem:[#allocation2] sm:$0xff]  ;;  %s134_s0 = smov [#allocation5]   ;;  %s65_s14 = sshll.u32 %s155_s1, 4  ;;  %s66_s14 = int_to_ptr.hbm [resolvable:$true] %s65_s14 }
   0x6   :  { %v25_v1 = vsel %vm24_vm0, %v23_v0, -inf  ;;  %s63_s11 = sshll.u32 %s134_s0, 4  ;;  %s64_s11 = int_to_ptr.vmem [resolvable:$true] %s63_s11 }
   0x7   :  { %v26_v2 = vrot.slane %v25_v1, 4 }
   0x9   :  { %v27_v3 = vmax.f32 %v25_v1, %v26_v2 }
   0xb   :  { %v28_v4 = vrot.slane %v27_v3, 2 }
   0xd   :  { %v29_v5 = vmax.f32 %v27_v3, %v28_v4 }
   0xf   :  { %v30_v6 = vrot.slane %v29_v5, 1 }
  0x11   :  { %v31_v7 = vmax.f32 %v29_v5, %v30_v6 }
  0x13   :  { %v32_v8 = vsub.f32 %v23_v0, %v31_v7 }
  0x15   :  { %v33_v9 = vmul.f32 1.442695, %v32_v8 }
  0x17   :  { %77 = vpow2.f32 %v33_v9 }
  0x1d   :  { %v78_v10 = vpop.eup %77 }
  0x1e   :  { %v35_v11 = vsel %vm24_vm0, %v78_v10, 0.0 }
  0x1f   :  { %v36_v12 = vrot.slane %v35_v11, 4 }
  0x21   :  { %v37_v13 = vadd.f32 %v36_v12, %v35_v11 }
  0x23   :  { %v38_v14 = vrot.slane %v37_v13, 2 }
  0x25   :  { %v39_v15 = vadd.f32 %v38_v14, %v37_v13 }
  0x27   :  { %v40_v16 = vrot.slane %v39_v15, 1 }
  0x29   :  { %v41_v17 = vadd.f32 %v40_v16, %v39_v15 }
  0x2b   :  { %79 = vrcp.f32 %v41_v17  ;;  %v53_v20 = vand.u32 2147483648, %v41_v17  ;;  %vm47_vm1 = vweird.f32 %v41_v17  ;;  %v51_v22 = vand.u32 2147483647, %v41_v17 }
  0x2d   :  { %v54_v24 = vor.u32 1.1754944e-38, %v53_v20  ;;  %vm52_vm4 = vcmp.eq.f32.partialorder %v51_v22, 8.507059e+37 }
  0x31   :  { %v80_v18 = vpop.eup %79 }
  0x32   :  { %v43_v19 = vmul.f32 %v80_v18, %v41_v17  ;;  %vm48_vm2 = vweird.f32 %v80_v18 }
  0x33   :  { %vm49_vm3 = vmor %vm47_vm1, %vm48_vm2 }
  0x34   :  { %v44_v21 = vsub.f32 1.0, %v43_v19 }
  0x36   :  { %v45_v23 = vmul.f32 %v80_v18, %v44_v21 }
  0x38   :  { %v46_v25 = vadd.f32 %v80_v18, %v45_v23 }
  0x3a   :  { %v50_v26 = vsel %vm49_vm3, %v80_v18, %v46_v25 }
  0x3b   :  { %v55_v27 = vsel %vm52_vm4, %v54_v24, %v50_v26 }
  0x3c   :  { %v56_v28 = vmul.f32 %v78_v10, %v55_v27 }
  0x3e   :  { %57 = vst.msk [vmem:[#allocation5] sm:$0xff] %vm24_vm0, %v56_v28 }
  0x3f   :  { %68 = dma.vmem_to_hbm [thread:$0]  %s64_s11, 128, %s66_s14, [#allocation4]  }
  0x40   :  { %131 = dma.done.wait [#allocation4], 128  }
  0x41   :  { %132 = vsyncadd [#allocation4], 4294967168 }
  0x42   :  { %73 = vsyncpa [#allocation3], 1 }
  0x43   :  { %74 = vsyncpa [#allocation4], 1 }

</bundles_post_ra>
